<compile_context>
chip_gen: v7x
topology: tpu7x:2x2x1
jax: 0.10.0
libtpu: 0.0.40
codegen_flags: <defaults>
</compile_context>

<pallas_src>
import functools

import jax
import jax.numpy as jnp
from jax.experimental import pallas as pl
from jax.experimental.pallas import tpu as pltpu

JOINTS_MAPPING = [5, 6, 7, 9, 10, 11, 17, 18, 19, 13, 14, 15, 1, 2, 3]
PARENT_MAPPING = [0, 5, 6, 0, 9, 10, 0, 17, 18, 0, 13, 14, 0, 1, 2]
N_OUT = 16       # number of output axes (16 hand transforms)
N_JOINTS = 21    # MANO joints (mapping indexes up to 19)
LANE = 128
MAX_TB = 4096    # batch-tile size; ~11 MiB double-buffered working set


def _round_up(x, m):
    return (x + m - 1) // m * m


# ---------------------------------------------------------------------------
# Pallas kernel: one batch tile (TB lane-dense batch elements) per grid step
# ---------------------------------------------------------------------------
def axis_kernel(v_ref, r9_ref, out_ref, *, sign):
    tb = v_ref.shape[-1]
    f32 = jnp.float32

    # Joint-row masks (replace the init / up_axis_base constant inputs).
    row = jax.lax.broadcasted_iota(jnp.int32, (N_OUT, tb), 0)
    init0 = jnp.where(row == 0, f32(sign), f32(0.0))    # b-axis init, x component
    up0 = jnp.where(row >= 13, f32(sign), f32(0.0))     # up_axis_base x component
    up2 = jnp.where(row >= 13, f32(1.0), f32(0.0))      # up_axis_base z component
    # up_axis_base y component is 1 everywhere.

    # parent - child joint differences, per xyz component, each (16, TB).
    v0 = v_ref[0]
    v1 = v_ref[1]
    v2 = v_ref[2]

    # per-joint R^T @ v :  rot_k = sum_i R[:, i, k] * v_i  with r9 row = 3*i + k.
    rot0 = r9_ref[0] * v0 + r9_ref[3] * v1 + r9_ref[6] * v2
    rot1 = r9_ref[1] * v0 + r9_ref[4] * v1 + r9_ref[7] * v2
    rot2 = r9_ref[2] * v0 + r9_ref[5] * v1 + r9_ref[8] * v2

    # b axis (row 0 has v == 0, so it reduces to the [sign, 0, 0] init row).
    b0 = rot0 + init0
    b1 = rot1
    b2 = rot2

    # l = cross(b, up_axis_base), up = (up0, 1, up2)
    l0 = b1 * up2 - b2            # b1*up2 - b2*up1   (up1 == 1)
    l1 = b2 * up0 - b0 * up2
    l2 = b0 - b1 * up0            # b0*up1 - b1*up0

    # u = cross(l, b)
    u0 = l1 * b2 - l2 * b1
    u1 = l2 * b0 - l0 * b2
    u2 = l0 * b1 - l1 * b0

    # Normalization via rsqrt (EUP slot); purely elementwise, no cross-lane reduce.
    # TODO(synk): matches torch.norm-divide semantics exactly (no eps clamp), so
    # degenerate b || up inputs (and zero-padded batch lanes) produce Inf/NaN just
    # like the PyTorch module; padded lanes are sliced off in the wrapper.
    binv = jax.lax.rsqrt(b0 * b0 + b1 * b1 + b2 * b2)
    uinv = jax.lax.rsqrt(u0 * u0 + u1 * u1 + u2 * u2)
    linv = jax.lax.rsqrt(l0 * l0 + l1 * l1 + l2 * l2)

    out_ref[0] = b0 * binv
    out_ref[1] = b1 * binv
    out_ref[2] = b2 * binv
    out_ref[3] = u0 * uinv
    out_ref[4] = u1 * uinv
    out_ref[5] = u2 * uinv
    out_ref[6] = l0 * linv
    out_ref[7] = l1 * linv
    out_ref[8] = l2 * linv


# ---------------------------------------------------------------------------
# wrapper (layout glue only: fused gather-diff, rotation flatten, SoA
# transposes, 128-lane padding, tiling, output split)
# ---------------------------------------------------------------------------
def axis_adaptive_layer(hand_joints, transf, side="right", max_tb=MAX_TB,
                        batch_last=False):
    assert side in ("right", "left")
    B = hand_joints.shape[0]
    f32 = jnp.float32
    hand_joints = hand_joints.astype(f32)
    transf = transf.astype(f32)
    sign = 1.0 if side == "right" else -1.0

    # Parent-child differences computed here as ONE fused gather+subtract pass;
    # the kernel receives 48 f32/elem of joint data instead of 96 (pg+cg).
    diff = hand_joints[:, PARENT_MAPPING] - hand_joints[:, JOINTS_MAPPING]     # (B,15,3)
    v = jnp.concatenate([jnp.zeros((B, 1, 3), f32), diff], axis=1)             # (B,16,3)
    v = jnp.transpose(v, (2, 1, 0))                                            # (3,16,B)

    # rotation blocks, row-major 3x3 flatten, batch last: r9[3*i+k, j, b]
    r9 = jnp.transpose(transf[:, :, :3, :3].reshape(B, N_OUT, 9), (2, 1, 0))   # (9,16,B)

    # --- batch tiling -------------------------------------------------------
    # Always pad to a multiple of 128 lanes (unmasked lane-dense stores).
    # For Bp > 256 use >= 2 grid steps so v7x's two TensorCores both get work;
    # cap the tile at MAX_TB (fits all chips' scoped VMEM double-buffered).
    Bp = _round_up(B, LANE)
    if Bp <= 2 * LANE:
        TB = Bp                                   # single small step
    elif Bp <= 2 * max_tb:
        TB = _round_up(Bp // 2, LANE)             # exactly 2 parallel steps
        Bp = _round_up(Bp, TB)
    else:
        TB = max_tb
        Bp = _round_up(Bp, TB)

    if Bp != B:
        pad = ((0, 0), (0, 0), (0, Bp - B))
        v = jnp.pad(v, pad)
        r9 = jnp.pad(r9, pad)

    grid = (Bp // TB,)

    cost = pl.CostEstimate(
        flops=800 * Bp,                             # ~50 flops/joint * 16 joints
        transcendentals=48 * Bp,                    # 3 rsqrt * 16 joints
        bytes_accessed=(3 + 9 + 9) * N_OUT * 4 * Bp)  # in + out rows, f32

    out = pl.pallas_call(
        functools.partial(axis_kernel, sign=sign),
        out_shape=jax.ShapeDtypeStruct((9, N_OUT, Bp), jnp.float32),
        grid=grid,
        in_specs=[pl.BlockSpec((3, N_OUT, TB), lambda i: (0, 0, i)),
                  pl.BlockSpec((9, N_OUT, TB), lambda i: (0, 0, i))],
        out_specs=pl.BlockSpec((9, N_OUT, TB), lambda i: (0, 0, i)),
        compiler_params=pltpu.CompilerParams(
            dimension_semantics=("parallel",),
            vmem_limit_bytes=32 * 1024 * 1024),
        cost_estimate=cost,
    )(v, r9)

    if batch_last:
        # Layout-tolerant consumers: skip the output transpose entirely.
        out = out[:, :, :B]
        return out[0:3], out[3:6], out[6:9]        # each (3, 16, B)

    out = jnp.transpose(out[:, :, :B], (2, 1, 0))  # (B, 16, 9)
    b_axis = out[..., 0:3]
    u_axis = out[..., 3:6]
    l_axis = out[..., 6:9]
    return b_axis, u_axis, l_axis


# ---------------------------------------------------------------------------
# pure-JAX reference mirroring the PyTorch forward
# ---------------------------------------------------------------------------
def reference(hand_joints, transf, side="right"):
    bs = transf.shape[0]
    sign = 1.0 if side == "right" else -1.0
    b = hand_joints[:, PARENT_MAPPING] - hand_joints[:, JOINTS_MAPPING]  # (B,15,3)
    R = transf[:, 1:, :3, :3]                                            # (B,15,3,3)
    b = jnp.einsum("bjik,bji->bjk", R, b)                                # R^T @ v
    init = jnp.tile(jnp.array([[[sign, 0.0, 0.0]]], jnp.float32), (bs, 1, 1))
    b = jnp.concatenate([init, b], axis=1)                               # (B,16,3)
    up = jnp.concatenate(
        [jnp.tile(jnp.array([[0.0, 1.0, 0.0]], jnp.float32), (13, 1)),
         jnp.tile(jnp.array([[sign, 1.0, 1.0]], jnp.float32), (3, 1))], axis=0)
    up = jnp.broadcast_to(up[None], (bs, 16, 3))
    l = jnp.cross(b, up)
    u = jnp.cross(l, b)
    nrm = lambda x: x / jnp.linalg.norm(x, axis=-1, keepdims=True)
    return nrm(b), nrm(u), nrm(l)


def _check(B, key, side):
    k1, k2 = jax.random.split(key)
    hand_joints = jax.random.normal(k1, (B, N_JOINTS, 3), jnp.float32)
    transf = jax.random.normal(k2, (B, N_OUT, 4, 4), jnp.float32)

    b_axis, u_axis, l_axis = axis_adaptive_layer(hand_joints, transf, side=side)
    jax.block_until_ready((b_axis, u_axis, l_axis))

    rb, ru, rl = reference(hand_joints, transf, side=side)
    assert b_axis.shape == (B, N_OUT, 3) and b_axis.dtype == jnp.float32
    assert jnp.allclose(b_axis, rb, atol=1e-5), f"b_axis mismatch (B={B})"
    assert jnp.allclose(u_axis, ru, atol=1e-5), f"u_axis mismatch (B={B})"
    assert jnp.allclose(l_axis, rl, atol=1e-5), f"l_axis mismatch (B={B})"


if __name__ == "__main__":
    key = jax.random.PRNGKey(0)
    ka, kb = jax.random.split(key)

    # small demo shape: padded to one 128-lane tile, grid=(1,)
    _check(B=2, key=ka, side="right")
    # larger batch exercising 128-aligned padding and the 2-step parallel grid
    _check(B=640, key=kb, side="left")

    print("KERNEL_OK")
</pallas_src>

<mosaic_0001>
module attributes {stable_mosaic.version = 11 : i64} {
  func.func @axis_kernel(%arg0: i32, %arg1: memref<3x16x128xf32, #tpu.memory_space<vmem>>, %arg2: memref<9x16x128xf32, #tpu.memory_space<vmem>>, %arg3: memref<9x16x128xf32, #tpu.memory_space<vmem>>) attributes {dimension_semantics = [#tpu.dimension_semantics<parallel>], iteration_bounds = array<i64: 1>, scalar_prefetch = 0 : i64, scratch_operands = 0 : i64, tpu.core_type = #tpu.core_type<tc>, window_params = [{transform_indices = @transform_0, window_bounds = array<i64: 3, 16, 128>}, {transform_indices = @transform_1, window_bounds = array<i64: 9, 16, 128>}, {transform_indices = @transform_2, window_bounds = array<i64: 9, 16, 128>}]} {
    %0 = tpu.iota {dimensions = array<i32: 0>} : vector<16x128xi32>
    %c0_i32 = arith.constant 0 : i32
    %1 = vector.broadcast %c0_i32 : i32 to vector<16x128xi32>
    %2 = arith.cmpi eq, %0, %1 : vector<16x128xi32>
    %cst = arith.constant 1.000000e+00 : f32
    %cst_0 = arith.constant 0.000000e+00 : f32
    %3 = vector.broadcast %cst : f32 to vector<16x128xf32>
    %4 = vector.broadcast %cst_0 : f32 to vector<16x128xf32>
    %5 = arith.select %2, %3, %4 : vector<16x128xi1>, vector<16x128xf32>
    %c13_i32 = arith.constant 13 : i32
    %6 = vector.broadcast %c13_i32 : i32 to vector<16x128xi32>
    %7 = arith.cmpi sge, %0, %6 : vector<16x128xi32>
    %cst_1 = arith.constant 1.000000e+00 : f32
    %cst_2 = arith.constant 0.000000e+00 : f32
    %8 = vector.broadcast %cst_1 : f32 to vector<16x128xf32>
    %9 = vector.broadcast %cst_2 : f32 to vector<16x128xf32>
    %10 = arith.select %7, %8, %9 : vector<16x128xi1>, vector<16x128xf32>
    %c13_i32_3 = arith.constant 13 : i32
    %11 = vector.broadcast %c13_i32_3 : i32 to vector<16x128xi32>
    %12 = arith.cmpi sge, %0, %11 : vector<16x128xi32>
    %cst_4 = arith.constant 1.000000e+00 : f32
    %cst_5 = arith.constant 0.000000e+00 : f32
    %13 = vector.broadcast %cst_4 : f32 to vector<16x128xf32>
    %14 = vector.broadcast %cst_5 : f32 to vector<16x128xf32>
    %15 = arith.select %12, %13, %14 : vector<16x128xi1>, vector<16x128xf32>
    %c0 = arith.constant 0 : index
    %c0_6 = arith.constant 0 : index
    %c0_7 = arith.constant 0 : index
    %16 = vector.load %arg1[%c0, %c0_6, %c0_7] : memref<3x16x128xf32, #tpu.memory_space<vmem>>, vector<1x16x128xf32>
    %17 = vector.shape_cast %16 : vector<1x16x128xf32> to vector<16x128xf32>
    %c1 = arith.constant 1 : index
    %c0_8 = arith.constant 0 : index
    %c0_9 = arith.constant 0 : index
    %18 = vector.load %arg1[%c1, %c0_8, %c0_9] : memref<3x16x128xf32, #tpu.memory_space<vmem>>, vector<1x16x128xf32>
    %19 = vector.shape_cast %18 : vector<1x16x128xf32> to vector<16x128xf32>
    %c2 = arith.constant 2 : index
    %c0_10 = arith.constant 0 : index
    %c0_11 = arith.constant 0 : index
    %20 = vector.load %arg1[%c2, %c0_10, %c0_11] : memref<3x16x128xf32, #tpu.memory_space<vmem>>, vector<1x16x128xf32>
    %21 = vector.shape_cast %20 : vector<1x16x128xf32> to vector<16x128xf32>
    %c0_12 = arith.constant 0 : index
    %c0_13 = arith.constant 0 : index
    %c0_14 = arith.constant 0 : index
    %22 = vector.load %arg2[%c0_12, %c0_13, %c0_14] : memref<9x16x128xf32, #tpu.memory_space<vmem>>, vector<1x16x128xf32>
    %23 = vector.shape_cast %22 : vector<1x16x128xf32> to vector<16x128xf32>
    %24 = arith.mulf %23, %17 : vector<16x128xf32>
    %c3 = arith.constant 3 : index
    %c0_15 = arith.constant 0 : index
    %c0_16 = arith.constant 0 : index
    %25 = vector.load %arg2[%c3, %c0_15, %c0_16] : memref<9x16x128xf32, #tpu.memory_space<vmem>>, vector<1x16x128xf32>
    %26 = vector.shape_cast %25 : vector<1x16x128xf32> to vector<16x128xf32>
    %27 = arith.mulf %26, %19 : vector<16x128xf32>
    %28 = arith.addf %24, %27 : vector<16x128xf32>
    %c6 = arith.constant 6 : index
    %c0_17 = arith.constant 0 : index
    %c0_18 = arith.constant 0 : index
    %29 = vector.load %arg2[%c6, %c0_17, %c0_18] : memref<9x16x128xf32, #tpu.memory_space<vmem>>, vector<1x16x128xf32>
    %30 = vector.shape_cast %29 : vector<1x16x128xf32> to vector<16x128xf32>
    %31 = arith.mulf %30, %21 : vector<16x128xf32>
    %32 = arith.addf %28, %31 : vector<16x128xf32>
    %c1_19 = arith.constant 1 : index
    %c0_20 = arith.constant 0 : index
    %c0_21 = arith.constant 0 : index
    %33 = vector.load %arg2[%c1_19, %c0_20, %c0_21] : memref<9x16x128xf32, #tpu.memory_space<vmem>>, vector<1x16x128xf32>
    %34 = vector.shape_cast %33 : vector<1x16x128xf32> to vector<16x128xf32>
    %35 = arith.mulf %34, %17 : vector<16x128xf32>
    %c4 = arith.constant 4 : index
    %c0_22 = arith.constant 0 : index
    %c0_23 = arith.constant 0 : index
    %36 = vector.load %arg2[%c4, %c0_22, %c0_23] : memref<9x16x128xf32, #tpu.memory_space<vmem>>, vector<1x16x128xf32>
    %37 = vector.shape_cast %36 : vector<1x16x128xf32> to vector<16x128xf32>
    %38 = arith.mulf %37, %19 : vector<16x128xf32>
    %39 = arith.addf %35, %38 : vector<16x128xf32>
    %c7 = arith.constant 7 : index
    %c0_24 = arith.constant 0 : index
    %c0_25 = arith.constant 0 : index
    %40 = vector.load %arg2[%c7, %c0_24, %c0_25] : memref<9x16x128xf32, #tpu.memory_space<vmem>>, vector<1x16x128xf32>
    %41 = vector.shape_cast %40 : vector<1x16x128xf32> to vector<16x128xf32>
    %42 = arith.mulf %41, %21 : vector<16x128xf32>
    %43 = arith.addf %39, %42 : vector<16x128xf32>
    %c2_26 = arith.constant 2 : index
    %c0_27 = arith.constant 0 : index
    %c0_28 = arith.constant 0 : index
    %44 = vector.load %arg2[%c2_26, %c0_27, %c0_28] : memref<9x16x128xf32, #tpu.memory_space<vmem>>, vector<1x16x128xf32>
    %45 = vector.shape_cast %44 : vector<1x16x128xf32> to vector<16x128xf32>
    %46 = arith.mulf %45, %17 : vector<16x128xf32>
    %c5 = arith.constant 5 : index
    %c0_29 = arith.constant 0 : index
    %c0_30 = arith.constant 0 : index
    %47 = vector.load %arg2[%c5, %c0_29, %c0_30] : memref<9x16x128xf32, #tpu.memory_space<vmem>>, vector<1x16x128xf32>
    %48 = vector.shape_cast %47 : vector<1x16x128xf32> to vector<16x128xf32>
    %49 = arith.mulf %48, %19 : vector<16x128xf32>
    %50 = arith.addf %46, %49 : vector<16x128xf32>
    %c8 = arith.constant 8 : index
    %c0_31 = arith.constant 0 : index
    %c0_32 = arith.constant 0 : index
    %51 = vector.load %arg2[%c8, %c0_31, %c0_32] : memref<9x16x128xf32, #tpu.memory_space<vmem>>, vector<1x16x128xf32>
    %52 = vector.shape_cast %51 : vector<1x16x128xf32> to vector<16x128xf32>
    %53 = arith.mulf %52, %21 : vector<16x128xf32>
    %54 = arith.addf %50, %53 : vector<16x128xf32>
    %55 = arith.addf %32, %5 : vector<16x128xf32>
    %56 = arith.mulf %43, %15 : vector<16x128xf32>
    %57 = arith.subf %56, %54 : vector<16x128xf32>
    %58 = arith.mulf %54, %10 : vector<16x128xf32>
    %59 = arith.mulf %55, %15 : vector<16x128xf32>
    %60 = arith.subf %58, %59 : vector<16x128xf32>
    %61 = arith.mulf %43, %10 : vector<16x128xf32>
    %62 = arith.subf %55, %61 : vector<16x128xf32>
    %63 = arith.mulf %60, %54 : vector<16x128xf32>
    %64 = arith.mulf %62, %43 : vector<16x128xf32>
    %65 = arith.subf %63, %64 : vector<16x128xf32>
    %66 = arith.mulf %62, %55 : vector<16x128xf32>
    %67 = arith.mulf %57, %54 : vector<16x128xf32>
    %68 = arith.subf %66, %67 : vector<16x128xf32>
    %69 = arith.mulf %57, %43 : vector<16x128xf32>
    %70 = arith.mulf %60, %55 : vector<16x128xf32>
    %71 = arith.subf %69, %70 : vector<16x128xf32>
    %72 = arith.mulf %55, %55 : vector<16x128xf32>
    %73 = arith.mulf %43, %43 : vector<16x128xf32>
    %74 = arith.addf %72, %73 : vector<16x128xf32>
    %75 = arith.mulf %54, %54 : vector<16x128xf32>
    %76 = arith.addf %74, %75 : vector<16x128xf32>
    %77 = math.rsqrt %76 : vector<16x128xf32>
    %78 = arith.mulf %65, %65 : vector<16x128xf32>
    %79 = arith.mulf %68, %68 : vector<16x128xf32>
    %80 = arith.addf %78, %79 : vector<16x128xf32>
    %81 = arith.mulf %71, %71 : vector<16x128xf32>
    %82 = arith.addf %80, %81 : vector<16x128xf32>
    %83 = math.rsqrt %82 : vector<16x128xf32>
    %84 = arith.mulf %57, %57 : vector<16x128xf32>
    %85 = arith.mulf %60, %60 : vector<16x128xf32>
    %86 = arith.addf %84, %85 : vector<16x128xf32>
    %87 = arith.mulf %62, %62 : vector<16x128xf32>
    %88 = arith.addf %86, %87 : vector<16x128xf32>
    %89 = math.rsqrt %88 : vector<16x128xf32>
    %90 = arith.mulf %55, %77 : vector<16x128xf32>
    %c0_33 = arith.constant 0 : index
    %c0_34 = arith.constant 0 : index
    %c0_35 = arith.constant 0 : index
    %91 = vector.load %arg3[%c0_33, %c0_34, %c0_35] : memref<9x16x128xf32, #tpu.memory_space<vmem>>, vector<1x16x128xf32>
    %92 = vector.shape_cast %91 : vector<1x16x128xf32> to vector<16x128xf32>
    %93 = vector.shape_cast %90 : vector<16x128xf32> to vector<1x16x128xf32>
    tpu.vector_store %arg3[%c0_33, %c0_34, %c0_35], %93 {strides = array<i32>} : memref<9x16x128xf32, #tpu.memory_space<vmem>>, vector<1x16x128xf32>,
    %94 = arith.mulf %43, %77 : vector<16x128xf32>
    %c1_36 = arith.constant 1 : index
    %c0_37 = arith.constant 0 : index
    %c0_38 = arith.constant 0 : index
    %95 = vector.load %arg3[%c1_36, %c0_37, %c0_38] : memref<9x16x128xf32, #tpu.memory_space<vmem>>, vector<1x16x128xf32>
    %96 = vector.shape_cast %95 : vector<1x16x128xf32> to vector<16x128xf32>
    %97 = vector.shape_cast %94 : vector<16x128xf32> to vector<1x16x128xf32>
    tpu.vector_store %arg3[%c1_36, %c0_37, %c0_38], %97 {strides = array<i32>} : memref<9x16x128xf32, #tpu.memory_space<vmem>>, vector<1x16x128xf32>,
    %98 = arith.mulf %54, %77 : vector<16x128xf32>
    %c2_39 = arith.constant 2 : index
    %c0_40 = arith.constant 0 : index
    %c0_41 = arith.constant 0 : index
    %99 = vector.load %arg3[%c2_39, %c0_40, %c0_41] : memref<9x16x128xf32, #tpu.memory_space<vmem>>, vector<1x16x128xf32>
    %100 = vector.shape_cast %99 : vector<1x16x128xf32> to vector<16x128xf32>
    %101 = vector.shape_cast %98 : vector<16x128xf32> to vector<1x16x128xf32>
    tpu.vector_store %arg3[%c2_39, %c0_40, %c0_41], %101 {strides = array<i32>} : memref<9x16x128xf32, #tpu.memory_space<vmem>>, vector<1x16x128xf32>,
    %102 = arith.mulf %65, %83 : vector<16x128xf32>
    %c3_42 = arith.constant 3 : index
    %c0_43 = arith.constant 0 : index
    %c0_44 = arith.constant 0 : index
    %103 = vector.load %arg3[%c3_42, %c0_43, %c0_44] : memref<9x16x128xf32, #tpu.memory_space<vmem>>, vector<1x16x128xf32>
    %104 = vector.shape_cast %103 : vector<1x16x128xf32> to vector<16x128xf32>
    %105 = vector.shape_cast %102 : vector<16x128xf32> to vector<1x16x128xf32>
    tpu.vector_store %arg3[%c3_42, %c0_43, %c0_44], %105 {strides = array<i32>} : memref<9x16x128xf32, #tpu.memory_space<vmem>>, vector<1x16x128xf32>,
    %106 = arith.mulf %68, %83 : vector<16x128xf32>
    %c4_45 = arith.constant 4 : index
    %c0_46 = arith.constant 0 : index
    %c0_47 = arith.constant 0 : index
    %107 = vector.load %arg3[%c4_45, %c0_46, %c0_47] : memref<9x16x128xf32, #tpu.memory_space<vmem>>, vector<1x16x128xf32>
    %108 = vector.shape_cast %107 : vector<1x16x128xf32> to vector<16x128xf32>
    %109 = vector.shape_cast %106 : vector<16x128xf32> to vector<1x16x128xf32>
    tpu.vector_store %arg3[%c4_45, %c0_46, %c0_47], %109 {strides = array<i32>} : memref<9x16x128xf32, #tpu.memory_space<vmem>>, vector<1x16x128xf32>,
    %110 = arith.mulf %71, %83 : vector<16x128xf32>
    %c5_48 = arith.constant 5 : index
    %c0_49 = arith.constant 0 : index
    %c0_50 = arith.constant 0 : index
    %111 = vector.load %arg3[%c5_48, %c0_49, %c0_50] : memref<9x16x128xf32, #tpu.memory_space<vmem>>, vector<1x16x128xf32>
    %112 = vector.shape_cast %111 : vector<1x16x128xf32> to vector<16x128xf32>
    %113 = vector.shape_cast %110 : vector<16x128xf32> to vector<1x16x128xf32>
    tpu.vector_store %arg3[%c5_48, %c0_49, %c0_50], %113 {strides = array<i32>} : memref<9x16x128xf32, #tpu.memory_space<vmem>>, vector<1x16x128xf32>,
    %114 = arith.mulf %57, %89 : vector<16x128xf32>
    %c6_51 = arith.constant 6 : index
    %c0_52 = arith.constant 0 : index
    %c0_53 = arith.constant 0 : index
    %115 = vector.load %arg3[%c6_51, %c0_52, %c0_53] : memref<9x16x128xf32, #tpu.memory_space<vmem>>, vector<1x16x128xf32>
    %116 = vector.shape_cast %115 : vector<1x16x128xf32> to vector<16x128xf32>
    %117 = vector.shape_cast %114 : vector<16x128xf32> to vector<1x16x128xf32>
    tpu.vector_store %arg3[%c6_51, %c0_52, %c0_53], %117 {strides = array<i32>} : memref<9x16x128xf32, #tpu.memory_space<vmem>>, vector<1x16x128xf32>,
    %118 = arith.mulf %60, %89 : vector<16x128xf32>
    %c7_54 = arith.constant 7 : index
    %c0_55 = arith.constant 0 : index
    %c0_56 = arith.constant 0 : index
    %119 = vector.load %arg3[%c7_54, %c0_55, %c0_56] : memref<9x16x128xf32, #tpu.memory_space<vmem>>, vector<1x16x128xf32>
    %120 = vector.shape_cast %119 : vector<1x16x128xf32> to vector<16x128xf32>
    %121 = vector.shape_cast %118 : vector<16x128xf32> to vector<1x16x128xf32>
    tpu.vector_store %arg3[%c7_54, %c0_55, %c0_56], %121 {strides = array<i32>} : memref<9x16x128xf32, #tpu.memory_space<vmem>>, vector<1x16x128xf32>,
    %122 = arith.mulf %62, %89 : vector<16x128xf32>
    %c8_57 = arith.constant 8 : index
    %c0_58 = arith.constant 0 : index
    %c0_59 = arith.constant 0 : index
    %123 = vector.load %arg3[%c8_57, %c0_58, %c0_59] : memref<9x16x128xf32, #tpu.memory_space<vmem>>, vector<1x16x128xf32>
    %124 = vector.shape_cast %123 : vector<1x16x128xf32> to vector<16x128xf32>
    %125 = vector.shape_cast %122 : vector<16x128xf32> to vector<1x16x128xf32>
    tpu.vector_store %arg3[%c8_57, %c0_58, %c0_59], %125 {strides = array<i32>} : memref<9x16x128xf32, #tpu.memory_space<vmem>>, vector<1x16x128xf32>,
    return
  }
  func.func @transform_0(%arg0: i32) -> (i32, i32, i32) {
    %c0_i32 = arith.constant 0 : i32
    %c0_i32_0 = arith.constant 0 : i32
    %c0_i32_1 = arith.constant 0 : i32
    return %c0_i32, %c0_i32_0, %arg0 : i32, i32, i32
  }
  func.func @transform_1(%arg0: i32) -> (i32, i32, i32) {
    %c0_i32 = arith.constant 0 : i32
    %c0_i32_0 = arith.constant 0 : i32
    %c0_i32_1 = arith.constant 0 : i32
    return %c0_i32, %c0_i32_0, %arg0 : i32, i32, i32
  }
  func.func @transform_2(%arg0: i32) -> (i32, i32, i32) {
    %c0_i32 = arith.constant 0 : i32
    %c0_i32_0 = arith.constant 0 : i32
    %c0_i32_1 = arith.constant 0 : i32
    return %c0_i32, %c0_i32_0, %arg0 : i32, i32, i32
  }
}

</mosaic_0001>

<bundles_post_ra>
// kernel: tpu_custom_call.1
= control target key start
LH: loop header
LB: loop body
LE: loop exit
PB: predicated region body
PF: predicated region fallthrough
CT: control target
= control target key end

     0   :  { %7 = vsyncpa [#allocation3], 0  ;;  %s483_s0 = inlined_call_operand.hbm [shape: f32[3,16,128], index: 0, kind: input, shape index: {}]   ;;  %s484_s1 = inlined_call_operand.hbm [shape: f32[9,16,128], index: 1, kind: input, shape index: {}]   ;;  %s485_s2 = inlined_call_operand.hbm [shape: f32[9,16,128], index: 2, kind: output, shape index: {}]  }
   0x1   :  { %8 = vsyncpa [#allocation6], 0 }
   0x2   :  { %9 = vsyncpa [#allocation4], 0  ;;  %s335_s9 = smov [#allocation2]   ;;  %s263_s13 = scalar_lea.hbm %s483_s0, 768 }
   0x3   :  { %s15_s10 = sshll.u32 %s335_s9, 4  ;;  %p264_p0 = scmp.ne.s32.totalorder %s483_s0, %s263_s13  ;;  %s16_s10 = int_to_ptr.vmem [resolvable:$true] %s15_s10 }
   0x4   :  { %p267_p1 = scmp.lt.u32.totalorder %s263_s13, %s483_s0 }
   0x6   :  { %p269_p2 = pnand %p267_p1, %p264_p0 }
   0x8   :  { %272 = shalt.err (!%p269_p2)
}
   0x9   :  { %s273_s18 = scalar_lea.vmem %s16_s10, 768  ;;  %p278_p4 = scmp.lt.s32.totalorder %s16_s10, %s16_s10 }
   0xa   :  { %p274_p3 = scmp.ne.s32.totalorder %s16_s10, %s273_s18  ;;  %p279_p5 = scmp.lt.s32.totalorder %s273_s18, %s273_s18 }
   0xc   :  { %p280_p6 = por %p279_p5, %p278_p4 }
   0xe   :  { %p281_p7 = pnand %p280_p6, %p274_p3 }
  0x10   :  { %284 = shalt.err (!%p281_p7)
}
  0x11   :  { %s336_s19 = smov 128   ;;  %s337_s20 = smov 8  }
  0x12   :  { %21 = dma.hbm_to_vmem [thread:$0]  %s483_s0, 768, %s16_s10, [#allocation3], %s336_s19, %s336_s19, %s337_s20  }
  0x13   :  { %s338_s23 = smov [#allocation5]   ;;  %s285_s27 = scalar_lea.hbm %s484_s1, 2304 }
  0x14   :  { %s27_s24 = sshll.u32 %s338_s23, 4  ;;  %p286_p8 = scmp.ne.s32.totalorder %s484_s1, %s285_s27  ;;  %s28_s24 = int_to_ptr.vmem [resolvable:$true] %s27_s24 }
  0x15   :  { %p289_p9 = scmp.lt.u32.totalorder %s285_s27, %s484_s1 }
  0x17   :  { %p291_p10 = pnand %p289_p9, %p286_p8 }
  0x19   :  { %294 = shalt.err (!%p291_p10)
}
  0x1a   :  { %s295_s4 = scalar_lea.vmem %s28_s24, 2304  ;;  %p300_p12 = scmp.lt.s32.totalorder %s28_s24, %s28_s24 }
  0x1b   :  { %p296_p11 = scmp.ne.s32.totalorder %s28_s24, %s295_s4  ;;  %p301_p13 = scmp.lt.s32.totalorder %s295_s4, %s295_s4 }
  0x1d   :  { %p302_p0 = por %p301_p13, %p300_p12 }
  0x1f   :  { %p303_p1 = pnand %p302_p0, %p296_p11 }
  0x21   :  { %306 = shalt.err (!%p303_p1)
}
  0x22   :  { %33 = dma.hbm_to_vmem [thread:$0]  %s484_s1, 2304, %s28_s24, [#allocation6], %s336_s19, %s336_s19, %s337_s20  }
  0x23   :  { %329 = dma.done.wait [#allocation3], 768  }
  0x24   :  { %330 = vsyncadd [#allocation3], 4294966528 }
  0x25   :  { %331 = dma.done.wait [#allocation6], 2304  }
  0x26   :  { %332 = vsyncadd [#allocation6], 4294964992  ;;  %v40_v0 = vlaneseq  ;;  %v51_v3 = vld [vmem:[#allocation2] sm:$0xff]  ;;  %v54_v4 = vld [vmem:[#allocation2 + $0x10] sm:$0xff]  ;;  %v339_v28 = vmov 0.0   ;;  %s340_s1 = smov [#allocation7]  }
  0x27   :  { %v57_v5 = vld [vmem:[#allocation2 + $0x20] sm:$0xff]  ;;  %v59_v6 = vld [vmem:[#allocation5] sm:$0xff]  ;;  %v52_v25 = vld [vmem:[#allocation2 + $0x8] sm:$0xff]  ;;  %s232_s6 = sshll.u32 %s340_s1, 4  ;;  %s233_s6 = int_to_ptr.vmem [resolvable:$true] %s232_s6 }
  0x28   :  { %v41_v1 = vshrl.u32 %v40_v0, 7  ;;  %v64_v7 = vld [vmem:[#allocation5 + $0x30] sm:$0xff]  ;;  %v71_v8 = vld [vmem:[#allocation5 + $0x60] sm:$0xff]  ;;  %v61_v9 = vmul.f32 %v59_v6, %v51_v3  ;;  %v55_v26 = vld [vmem:[#allocation2 + $0x18] sm:$0xff]  ;;  %s307_s7 = scalar_lea.vmem %s233_s6, 2304  ;;  %p312_p3 = scmp.lt.s32.totalorder %s233_s6, %s233_s6 }
  0x29   :  { %v66_v10 = vmul.f32 %v64_v7, %v54_v4  ;;  %v73_v11 = vmul.f32 %v71_v8, %v57_v5  ;;  %v78_v12 = vld [vmem:[#allocation5 + $0x10] sm:$0xff]  ;;  %v83_v13 = vld [vmem:[#allocation5 + $0x40] sm:$0xff]  ;;  %v58_v27 = vld [vmem:[#allocation2 + $0x28] sm:$0xff]  ;;  %p308_p2 = scmp.ne.s32.totalorder %s233_s6, %s307_s7  ;;  %p313_p4 = scmp.lt.s32.totalorder %s307_s7, %s307_s7 }
  0x2a   :  { %v42_v2 = vadd.s32 8, %v41_v1  ;;  %vm43_vm0 = vcmp.eq.s32.totalorder %v41_v1, 0  ;;  %v90_v14 = vld [vmem:[#allocation5 + $0x70] sm:$0xff]  ;;  %v80_v15 = vmul.f32 %v78_v12, %v51_v3  ;;  %v85_v16 = vmul.f32 %v83_v13, %v54_v4  ;;  %v97_v18 = vld [vmem:[#allocation5 + $0x20] sm:$0xff]  ;;  %v60_v31 = vld [vmem:[#allocation5 + $0x8] sm:$0xff] }
  0x2b   :  { %v92_v17 = vmul.f32 %v90_v14, %v57_v5  ;;  %v102_v19 = vld [vmem:[#allocation5 + $0x50] sm:$0xff]  ;;  %v109_v20 = vld [vmem:[#allocation5 + $0x80] sm:$0xff]  ;;  %v68_v21 = vadd.f32 %v66_v10, %v61_v9  ;;  %v99_v22 = vmul.f32 %v97_v18, %v51_v3  ;;  %v45_v29 = vsel %vm43_vm0, 1.0, %v339_v28  ;;  %v65_v32 = vld [vmem:[#allocation5 + $0x38] sm:$0xff]  ;;  %p314_p5 = por %p313_p4, %p312_p3 }
  0x2c   :  { %vm48_vm1 = vcmp.ge.s32.totalorder %v42_v2, 13  ;;  %v104_v23 = vmul.f32 %v102_v19, %v54_v4  ;;  %v111_v24 = vmul.f32 %v109_v20, %v57_v5  ;;  %v87_v30 = vadd.f32 %v85_v16, %v80_v15  ;;  %v72_v33 = vld [vmem:[#allocation5 + $0x68] sm:$0xff]  ;;  %v79_v39 = vld [vmem:[#allocation5 + $0x18] sm:$0xff] }
  0x2d   :  { %v50_v34 = vsel %vm48_vm1, 1.0, %v339_v28  ;;  %v75_v35 = vadd.f32 %v73_v11, %v68_v21  ;;  %v62_v37 = vmul.f32 %v60_v31, %v52_v25  ;;  %v67_v38 = vmul.f32 %v65_v32, %v55_v26  ;;  %v84_v40 = vld [vmem:[#allocation5 + $0x48] sm:$0xff]  ;;  %v91_v41 = vld [vmem:[#allocation5 + $0x78] sm:$0xff]  ;;  %p315_p6 = pnand %p314_p5, %p308_p2 }
  0x2e   :  { %v106_v36 = vadd.f32 %v104_v23, %v99_v22  ;;  %v388_v42 = vadd.f32 %v92_v17, %v87_v30  ;;  %v74_v43 = vmul.f32 %v72_v33, %v58_v27  ;;  %v81_v44 = vmul.f32 %v79_v39, %v52_v25  ;;  %v98_v46 = vld [vmem:[#allocation5 + $0x28] sm:$0xff]  ;;  %v103_v47 = vld [vmem:[#allocation5 + $0x58] sm:$0xff] }
  0x2f   :  { %v86_v45 = vmul.f32 %v84_v40, %v55_v26  ;;  %v110_v48 = vld [vmem:[#allocation5 + $0x88] sm:$0xff]  ;;  %v392_v50 = vadd.f32 %v75_v35, %v45_v29  ;;  %v69_v51 = vadd.f32 %v67_v38, %v62_v37  ;;  %v93_v52 = vmul.f32 %v91_v41, %v58_v27 }
  0x30   :  { %v390_v49 = vadd.f32 %v111_v24, %v106_v36  ;;  %v149_v53 = vmul.f32 %v388_v42, %v388_v42  ;;  %v100_v55 = vmul.f32 %v98_v46, %v52_v25  ;;  %v105_v56 = vmul.f32 %v103_v47, %v55_v26 }
  0x31   :  { %v88_v54 = vadd.f32 %v86_v45, %v81_v44  ;;  %v147_v57 = vmul.f32 %v392_v50, %v392_v50  ;;  %v400_v59 = vadd.f32 %v74_v43, %v69_v51  ;;  %v112_v60 = vmul.f32 %v110_v48, %v58_v27 }
  0x32   :  { %v153_v58 = vmul.f32 %v390_v49, %v390_v49  ;;  %v107_v62 = vadd.f32 %v105_v56, %v100_v55  ;;  %v117_v63 = vmul.f32 0.0, %v388_v42  ;;  %v121_v0 = vmul.f32 0.0, %v390_v49 }
  0x33   :  { %v402_v61 = vadd.f32 %v93_v52, %v88_v54  ;;  %v151_v1 = vadd.f32 %v149_v53, %v147_v57  ;;  %v148_v2 = vmul.f32 %v400_v59, %v400_v59  ;;  %v123_v3 = vmul.f32 0.0, %v392_v50 }
  0x34   :  { %v409_v4 = vadd.f32 %v112_v60, %v107_v62  ;;  %v414_v6 = vsub.f32 %v117_v63, %v390_v49  ;;  %v417_v7 = vsub.f32 %v392_v50, %v117_v63  ;;  %v124_v11 = vmul.f32 %v400_v59, %v50_v34 }
  0x35   :  { %v150_v5 = vmul.f32 %v402_v61, %v402_v61  ;;  %v155_v8 = vadd.f32 %v153_v58, %v151_v1  ;;  %v419_v9 = vsub.f32 %v121_v0, %v123_v3  ;;  %v118_v10 = vmul.f32 %v402_v61, %v50_v34 }
  0x36   :  { %v154_v13 = vmul.f32 %v409_v4, %v409_v4  ;;  %v131_v14 = vmul.f32 %v417_v7, %v388_v42  ;;  %v135_v15 = vmul.f32 %v417_v7, %v392_v50  ;;  %v137_v17 = vmul.f32 %v414_v6, %v390_v49 }
  0x37   :  { %v152_v12 = vadd.f32 %v150_v5, %v148_v2  ;;  %251 = vrsqrt.f32 %v155_v8  ;;  %v129_v16 = vmul.f32 %v419_v9, %v390_v49  ;;  %v141_v18 = vmul.f32 %v414_v6, %v388_v42 }
  0x38   :  { %v143_v20 = vmul.f32 %v419_v9, %v392_v50  ;;  %v171_v21 = vmul.f32 %v414_v6, %v414_v6  ;;  %v173_v22 = vmul.f32 %v419_v9, %v419_v9  ;;  %v139_v24 = vsub.f32 %v135_v15, %v137_v17 }
  0x39   :  { %v156_v19 = vadd.f32 %v154_v13, %v152_v12  ;;  %v133_v23 = vsub.f32 %v129_v16, %v131_v14  ;;  %v177_v25 = vmul.f32 %v417_v7, %v417_v7  ;;  %v444_v26 = vsub.f32 %v118_v10, %v409_v4 }
  0x3a   :  { %v145_v27 = vsub.f32 %v141_v18, %v143_v20  ;;  %v175_v28 = vadd.f32 %v173_v22, %v171_v21  ;;  %v122_v29 = vmul.f32 %v409_v4, %v50_v34  ;;  %v161_v31 = vmul.f32 %v139_v24, %v139_v24 }
  0x3b   :  { %253 = vrsqrt.f32 %v156_v19  ;;  %v159_v30 = vmul.f32 %v133_v23, %v133_v23  ;;  %v128_v32 = vsub.f32 %v400_v59, %v118_v10  ;;  %v138_v33 = vmul.f32 %v444_v26, %v409_v4 }
  0x3c   :  { %v165_v35 = vmul.f32 %v145_v27, %v145_v27  ;;  %v179_v36 = vadd.f32 %v177_v25, %v175_v28  ;;  %v126_v37 = vsub.f32 %v122_v29, %v124_v11  ;;  %v142_v38 = vmul.f32 %v444_v26, %v402_v61 }
  0x3d   :  { %v163_v39 = vadd.f32 %v161_v31, %v159_v30  ;;  %v132_v40 = vmul.f32 %v128_v32, %v402_v61  ;;  %v136_v41 = vmul.f32 %v128_v32, %v400_v59  ;;  %v172_v34 = vmul.f32 %v444_v26, %v444_v26 }
  0x3e   :  { %255 = vrsqrt.f32 %v179_v36  ;;  %v130_v43 = vmul.f32 %v126_v37, %v409_v4  ;;  %v144_v44 = vmul.f32 %v126_v37, %v400_v59  ;;  %v174_v45 = vmul.f32 %v126_v37, %v126_v37 }
  0x3f   :  { %v167_v46 = vadd.f32 %v165_v35, %v163_v39  ;;  %v140_v47 = vsub.f32 %v136_v41, %v138_v33  ;;  %v178_v48 = vmul.f32 %v128_v32, %v128_v32 }
  0x40   :  { %v134_v51 = vsub.f32 %v130_v43, %v132_v40  ;;  %v146_v52 = vsub.f32 %v142_v38, %v144_v44  ;;  %v176_v53 = vadd.f32 %v174_v45, %v172_v34 }
  0x41   :  { %v252_v54 = vpop.eup %251  ;;  %257 = vrsqrt.f32 %v167_v46  ;;  %v162_v55 = vmul.f32 %v140_v47, %v140_v47 }
  0x42   :  { %v183_v56 = vmul.f32 %v252_v54, %v392_v50  ;;  %v187_v57 = vmul.f32 %v252_v54, %v388_v42  ;;  %v192_v58 = vmul.f32 %v252_v54, %v390_v49  ;;  %v160_v60 = vmul.f32 %v134_v51, %v134_v51 }
  0x43   :  { %v166_v62 = vmul.f32 %v146_v52, %v146_v52  ;;  %v180_v63 = vadd.f32 %v178_v48, %v176_v53 }
  0x44   :  { %185 = vst [vmem:[#allocation7] sm:$0xff] %v183_v56  ;;  %190 = vst [vmem:[#allocation7 + $0x10] sm:$0xff] %v187_v57  ;;  %v164_v1 = vadd.f32 %v162_v55, %v160_v60 }
  0x45   :  { %v254_v0 = vpop.eup %253  ;;  %195 = vst [vmem:[#allocation7 + $0x20] sm:$0xff] %v192_v58  ;;  %259 = vrsqrt.f32 %v180_v63 }
  0x46   :  { %v184_v2 = vmul.f32 %v254_v0, %v400_v59  ;;  %v188_v3 = vmul.f32 %v254_v0, %v402_v61  ;;  %v193_v5 = vmul.f32 %v254_v0, %v409_v4  ;;  %v168_v50 = vadd.f32 %v166_v62, %v164_v1 }
  0x48   :  { %186 = vst [vmem:[#allocation7 + $0x8] sm:$0xff] %v184_v2  ;;  %191 = vst [vmem:[#allocation7 + $0x18] sm:$0xff] %v188_v3  ;;  %v256_v42 = vpop.eup %255  ;;  %261 = vrsqrt.f32 %v168_v50 }
  0x49   :  { %196 = vst [vmem:[#allocation7 + $0x28] sm:$0xff] %v193_v5  ;;  %v212_v49 = vmul.f32 %v256_v42, %v414_v6  ;;  %v217_v8 = vmul.f32 %v256_v42, %v419_v9  ;;  %v222_v10 = vmul.f32 %v256_v42, %v417_v7 }
  0x4b   :  { %v258_v11 = vpop.eup %257  ;;  %215 = vst [vmem:[#allocation7 + $0x60] sm:$0xff] %v212_v49  ;;  %220 = vst [vmem:[#allocation7 + $0x70] sm:$0xff] %v217_v8 }
  0x4c   :  { %225 = vst [vmem:[#allocation7 + $0x80] sm:$0xff] %v222_v10  ;;  %v197_v59 = vmul.f32 %v258_v11, %v133_v23  ;;  %v202_v61 = vmul.f32 %v258_v11, %v139_v24  ;;  %v207_v4 = vmul.f32 %v258_v11, %v145_v27 }
  0x4e   :  { %200 = vst [vmem:[#allocation7 + $0x30] sm:$0xff] %v197_v59  ;;  %205 = vst [vmem:[#allocation7 + $0x40] sm:$0xff] %v202_v61 }
  0x4f   :  { %210 = vst [vmem:[#allocation7 + $0x50] sm:$0xff] %v207_v4  ;;  %v260_v12 = vpop.eup %259 }
  0x50   :  { %v213_v13 = vmul.f32 %v260_v12, %v444_v26  ;;  %v218_v14 = vmul.f32 %v260_v12, %v126_v37  ;;  %v223_v15 = vmul.f32 %v260_v12, %v128_v32 }
  0x52   :  { %v262_v6 = vpop.eup %261  ;;  %216 = vst [vmem:[#allocation7 + $0x68] sm:$0xff] %v213_v13  ;;  %221 = vst [vmem:[#allocation7 + $0x78] sm:$0xff] %v218_v14 }
  0x53   :  { %226 = vst [vmem:[#allocation7 + $0x88] sm:$0xff] %v223_v15  ;;  %v198_v7 = vmul.f32 %v262_v6, %v134_v51  ;;  %v203_v9 = vmul.f32 %v262_v6, %v140_v47  ;;  %v208_v16 = vmul.f32 %v262_v6, %v146_v52 }
  0x55   :  { %201 = vst [vmem:[#allocation7 + $0x38] sm:$0xff] %v198_v7  ;;  %206 = vst [vmem:[#allocation7 + $0x48] sm:$0xff] %v203_v9 }
  0x56   :  { %211 = vst [vmem:[#allocation7 + $0x58] sm:$0xff] %v208_v16 }
  0x57   :  { %318 = shalt.err (!%p315_p6)
}
  0x58   :  { %s319_s10 = scalar_lea.hbm %s485_s2, 2304 }
  0x59   :  { %p320_p7 = scmp.ne.s32.totalorder %s485_s2, %s319_s10  ;;  %p323_p8 = scmp.lt.u32.totalorder %s319_s10, %s485_s2 }
  0x5b   :  { %p325_p9 = pnand %p323_p8, %p320_p7 }
  0x5d   :  { %328 = shalt.err (!%p325_p9)
}
  0x5e   :  { %238 = dma.vmem_to_hbm [thread:$0]  %s233_s6, 2304, %s485_s2, [#allocation4], %s336_s19, %s336_s19, %s337_s20  }
  0x5f   :  { %333 = dma.done.wait [#allocation4], 2304  }
  0x60   :  { %334 = vsyncadd [#allocation4], 4294964992 }
  0x61   :  { %242 = vsyncpa [#allocation3], 1 }
  0x62   :  { %243 = vsyncpa [#allocation6], 1 }
  0x63   :  { %244 = vsyncpa [#allocation4], 1 }

</bundles_post_ra>
